<compile_context>
chip_gen: v6e
topology: v6e:2x2x1
jax: 0.10.0
libtpu: 0.0.40
codegen_flags: <defaults>
</compile_context>

<pallas_src>
import functools

import jax
import jax.numpy as jnp
from jax import lax
from jax.experimental import pallas as pl
from jax.experimental.pallas import tpu as pltpu


def _round_up(x, m):
    return ((x + m - 1) // m) * m


def _soft_dcg_kernel(preds_ref, target_ref, dcg_ref, acc_ref, *,
                     inv_two_sigma, tj):
    """Accumulates raw-erf row sums over j tiles; emits per-list soft DCG."""
    j = pl.program_id(1)
    l_pad = preds_ref.shape[1]

    @pl.when(j == 0)
    def _():
        acc_ref[...] = jnp.zeros_like(acc_ref)

    # Pre-scale by 1/(2*sigma) once per tile (O(TB*L)) so the O(TB*L*TJ) inner
    # expression is just sub -> erf -> add.
    pi_s = preds_ref[...] * inv_two_sigma                       # [TB, L_pad]
    if tj == l_pad:
        pj_s = pi_s                                             # single j step
    else:
        start = pl.multiple_of(j * tj, 128)                     # TJ % 128 == 0
        pj_s = preds_ref[:, pl.ds(start, tj)] * inv_two_sigma   # [TB, TJ]

    # Raw erf accumulated; the 0.5*(1+erf) affine is folded into the epilogue.
    e = lax.erf(pi_s[:, :, None] - pj_s[:, None, :])            # [TB, L_pad, TJ]
    acc_ref[...] += jnp.sum(e, axis=2)

    @pl.when(j == pl.num_programs(1) - 1)
    def _():
        # sum_j 0.5*(1+erf) over all L_pad columns == 0.5*acc + 0.5*L_pad
        # (padded columns contribute erf == -1 exactly, so they cancel).  The
        # diagonal term is erf(0) == 0, i.e. p[i,i] == 0.5 exactly, so
        # expected_ranks = 1 + (row_sum - 0.5) = row_sum + 0.5.
        expected_ranks = 0.5 * acc_ref[...] + (0.5 * (l_pad + 1))
        gains = jnp.exp2(target_ref[...]) - 1.0
        discounts = jnp.log2(expected_ranks + 1.0)
        dcg_ref[...] = jnp.sum(gains * pl.reciprocal(discounts, approx=False),
                               axis=1, keepdims=True)


def _vmem_budgets():
    """(pairwise-tile budget, base vmem limit, vmem capacity) for this chip."""
    try:
        cap = getattr(pltpu.get_tpu_info(), "vmem_capacity_bytes", None)
    except Exception:
        cap = None
    if cap is None:
        cap = 64 * 1024 * 1024                       # conservative (v7x-sized)
    if cap >= 100 * 1024 * 1024:                     # v5e / v6e: 128 MiB VMEM
        return 12 * 1024 * 1024, 64 * 1024 * 1024, cap
    return 6 * 1024 * 1024, 32 * 1024 * 1024, cap    # v7x: 64 MiB / 32 scoped


def _choose_tiles(B, L, max_p_bytes):
    """Pick (TB, B_pad, TJ, L_pad) for the [TB, L_pad, TJ] pairwise tile."""
    # List axis: pad to a multiple of 128 (not of TJ) to avoid wasted work.
    if L % 128 != 0 and L <= 512:
        L_pad, tj_cands = L, [L]                     # single j step, full dim
    else:
        L_pad = _round_up(L, 128)
        tj_cands = [t for t in (L_pad, 512, 384, 256, 128)
                    if t <= L_pad and L_pad % t == 0]
    # Largest TJ whose pairwise tile fits the budget with either the whole
    # batch resident or a >=8-row batch tile.  Never inflate TB past the
    # budget to reach the sublane minimum; shrink TJ instead.
    TJ = tb_cap = None
    for t in tj_cands:
        cap = max(1, max_p_bytes // (L_pad * t * 4))
        if B <= cap or cap >= 8:
            TJ, tb_cap = t, cap
            break
    if TJ is None:                                   # even smallest TJ is big:
        TJ = tj_cands[-1]                            # TB=8 floor; caller raises
        tb_cap = max(1, max_p_bytes // (L_pad * TJ * 4))   # the vmem limit.
    # Batch axis.
    if B <= 8 or (B < 16 and B <= tb_cap):
        TB, B_pad = B, B                             # block == full batch dim
    else:
        half = _round_up((B + 1) // 2, 8)            # >= 2 tiles (v7x megacore)
        TB = min(max(8, (tb_cap // 8) * 8), half)
        B_pad = _round_up(B, TB)
    return TB, B_pad, TJ, L_pad


def soft_rank_ndcg_loss(preds, target, sigma=1.0, k=None, *, _max_p_bytes=None):
    """1 - mean(soft NDCG).  Matches SoftRankNDCGLoss.forward with k=None."""
    # TODO(synk): top-k truncation (k is not None) path not implemented; only
    # the default k=None branch of the module is supported.
    assert k is None, "only k=None is supported"

    preds = preds.astype(jnp.float32)
    target = target.astype(jnp.float32)
    B, L = preds.shape

    # ---- Ideal DCG entirely in the wrapper (needs a sort). -----------------
    ideal = jnp.sort(target, axis=1)[:, ::-1]
    ideal_gains = jnp.exp2(ideal) - 1.0
    ideal_discounts = jnp.log2(jnp.arange(1, L + 1, dtype=jnp.float32) + 1.0)
    idcg = jnp.sum(ideal_gains / ideal_discounts, axis=1)            # [B]

    # ---- Tile selection + per-generation VMEM budgets. ---------------------
    max_p_bytes, base_limit, vmem_cap = _vmem_budgets()
    if _max_p_bytes is not None:
        max_p_bytes = _max_p_bytes
    TB, B_pad, TJ, L_pad = _choose_tiles(B, L, max_p_bytes)
    assert TJ == L_pad or TJ % 128 == 0

    interm = TB * L_pad * TJ * 4                     # [TB, L_pad, TJ] f32 temp
    resident = (5 * TB * L_pad + 4 * TB) * 4         # blocks + acc + out
    vmem_limit = int(min(max(base_limit, 2 * interm + resident + (2 << 20)),
                         vmem_cap * 3 // 4))
    # TODO(synk): for very large lists (L_pad >~ 6k) the TB=8 floor can still
    # push the pairwise temp past the scoped VMEM; an i-axis grid split would
    # be needed there.

    # ---- Neutral padding:
    #  * padded preds = large positive -> (real - pad) * inv_two_sigma is
    #    hugely negative -> erf == -1 exactly -> padded columns cancel in the
    #    affine fold (no mask needed).
    #  * padded target = 0 -> gains = 0 -> padded rows contribute 0 DCG.
    if (B_pad, L_pad) != (B, L):
        pad_val = float(1e6 * max(1.0, 2.0 * sigma))
        preds_p = jnp.full((B_pad, L_pad), pad_val, jnp.float32).at[:B, :L].set(preds)
        target_p = jnp.zeros((B_pad, L_pad), jnp.float32).at[:B, :L].set(target)
    else:
        preds_p, target_p = preds, target

    nb, nj = B_pad // TB, L_pad // TJ
    kernel = functools.partial(_soft_dcg_kernel,
                               inv_two_sigma=float(1.0 / (2.0 * sigma)), tj=TJ)

    dcg = pl.pallas_call(
        kernel,
        out_shape=jax.ShapeDtypeStruct((B_pad, 1), jnp.float32),
        grid=(nb, nj),
        in_specs=[
            pl.BlockSpec((TB, L_pad), lambda b, j: (b, 0)),   # preds row block
            pl.BlockSpec((TB, L_pad), lambda b, j: (b, 0)),   # target
        ],
        out_specs=pl.BlockSpec((TB, 1), lambda b, j: (b, 0)),
        scratch_shapes=[pltpu.VMEM((TB, L_pad), jnp.float32)],
        compiler_params=pltpu.CompilerParams(
            dimension_semantics=("parallel", "arbitrary"),
            vmem_limit_bytes=vmem_limit,
        ),
    )(preds_p, target_p)

    ndcg = dcg[:B, 0] / (idcg + 1e-10)
    return 1.0 - jnp.mean(ndcg)


def _reference(preds, target, sigma):
    """Pure-JAX transcription of the PyTorch forward (k=None)."""
    B, L = preds.shape
    diff = preds[:, :, None] - preds[:, None, :]
    p = 0.5 * (1.0 + lax.erf(diff / (2.0 * sigma)))
    eye = jnp.eye(L, dtype=bool)
    p = jnp.where(eye[None], 0.0, p)
    expected_ranks = 1.0 + p.sum(axis=2)
    gains = 2.0 ** target - 1.0
    discounts = jnp.log2(expected_ranks + 1.0)
    dcg = (gains / discounts).sum(axis=1)
    ideal = jnp.sort(target, axis=1)[:, ::-1]
    ideal_gains = 2.0 ** ideal - 1.0
    ideal_discounts = jnp.log2(jnp.arange(1, L + 1, dtype=jnp.float32) + 1.0)
    idcg = (ideal_gains / ideal_discounts).sum(axis=1)
    ndcg = dcg / (idcg + 1e-10)
    return 1.0 - ndcg.mean()


if __name__ == "__main__":
    def run_case(b, l, sigma, seed, **kw):
        kp, kt = jax.random.split(jax.random.PRNGKey(seed))
        preds = jax.random.normal(kp, (b, l), dtype=jnp.float32)
        target = jax.random.uniform(kt, (b, l), dtype=jnp.float32,
                                    minval=0.0, maxval=4.0)
        loss = jax.block_until_ready(
            soft_rank_ndcg_loss(preds, target, sigma=sigma, k=None, **kw))
        ref = _reference(preds, target, sigma)
        assert jnp.allclose(loss, ref, atol=1e-4, rtol=1e-4), \
            (b, l, float(loss), float(ref))

    _ = jax.random.PRNGKey(0)  # deterministic base seed (per-case splits below)

    # 1) tiny demo shape: single tile, blocks == full arrays.
    run_case(4, 16, 1.0, 0)
    # 2) L already a multiple of 128: no padding, single j step (TJ = 640).
    run_case(2, 640, 0.7, 1)
    # 3) unaligned L + tiny budget: forces L_pad=768, TJ=128, nj=6 -> exercises
    #    multi-step j accumulation, in-kernel j slicing, and column padding.
    run_case(4, 650, 1.3, 2, _max_p_bytes=1 << 20)
    # 4) B=24 -> two batch tiles (TB=16) with row padding -> exercises the
    #    "parallel" batch tiling path.
    run_case(24, 96, 1.0, 3)

    print("KERNEL_OK")
</pallas_src>

<mosaic_0001>
module attributes {stable_mosaic.version = 11 : i64} {
  func.func @_soft_dcg_kernel(%arg0: i32, %arg1: i32, %arg2: memref<4x16xf32, #tpu.memory_space<vmem>>, %arg3: memref<4x16xf32, #tpu.memory_space<vmem>>, %arg4: memref<4x1xf32, #tpu.memory_space<vmem>>, %arg5: memref<4x16xf32, #tpu.memory_space<vmem>>) attributes {dimension_semantics = [#tpu.dimension_semantics<parallel>, #tpu.dimension_semantics<arbitrary>], iteration_bounds = array<i64: 1, 1>, scalar_prefetch = 0 : i64, scratch_operands = 1 : i64, tpu.core_type = #tpu.core_type<tc>, window_params = [{transform_indices = @transform_0, window_bounds = array<i64: 4, 16>}, {transform_indices = @transform_1, window_bounds = array<i64: 4, 16>}, {transform_indices = @transform_2, window_bounds = array<i64: 4, 1>}]} {
    %c0_i32 = arith.constant 0 : i32
    %0 = arith.cmpi eq, %arg1, %c0_i32 : i32
    %1 = arith.extui %0 : i1 to i32
    %c0_i32_0 = arith.constant 0 : i32
    %2 = arith.cmpi ne, %1, %c0_i32_0 : i32
    scf.if %2 {
      %cst_9 = arith.constant 0.000000e+00 : f32
      %19 = vector.broadcast %cst_9 : f32 to vector<4x16xf32>
      %c0_10 = arith.constant 0 : index
      %c0_11 = arith.constant 0 : index
      %20 = vector.load %arg5[%c0_10, %c0_11] : memref<4x16xf32, #tpu.memory_space<vmem>>, vector<4x16xf32>
      tpu.vector_store %arg5[%c0_10, %c0_11], %19 {strides = array<i32>} : memref<4x16xf32, #tpu.memory_space<vmem>>, vector<4x16xf32>,
    } else {
    }
    %c0 = arith.constant 0 : index
    %c0_1 = arith.constant 0 : index
    %3 = vector.load %arg2[%c0, %c0_1] : memref<4x16xf32, #tpu.memory_space<vmem>>, vector<4x16xf32>
    %cst = arith.constant 5.000000e-01 : f32
    %4 = vector.broadcast %cst : f32 to vector<4x16xf32>
    %5 = arith.mulf %3, %4 : vector<4x16xf32>
    %6 = vector.shape_cast %5 : vector<4x16xf32> to vector<4x16x1xf32>
    %7 = vector.shape_cast %5 : vector<4x16xf32> to vector<4x1x16xf32>
    %8 = vector.broadcast %6 : vector<4x16x1xf32> to vector<4x16x16xf32>
    %9 = vector.broadcast %7 : vector<4x1x16xf32> to vector<4x16x16xf32>
    %10 = arith.subf %8, %9 : vector<4x16x16xf32>
    %11 = math.erf %10 : vector<4x16x16xf32>
    %c0_2 = arith.constant 0 : index
    %c0_3 = arith.constant 0 : index
    %12 = vector.load %arg5[%c0_2, %c0_3] : memref<4x16xf32, #tpu.memory_space<vmem>>, vector<4x16xf32>
    %cst_4 = arith.constant dense<0.000000e+00> : vector<4x16xf32>
    %13 = vector.multi_reduction <add>, %11, %cst_4 [2] : vector<4x16x16xf32> to vector<4x16xf32>
    %14 = arith.addf %12, %13 : vector<4x16xf32>
    %c0_5 = arith.constant 0 : index
    %c0_6 = arith.constant 0 : index
    %15 = vector.load %arg5[%c0_5, %c0_6] : memref<4x16xf32, #tpu.memory_space<vmem>>, vector<4x16xf32>
    tpu.vector_store %arg5[%c0_5, %c0_6], %14 {strides = array<i32>} : memref<4x16xf32, #tpu.memory_space<vmem>>, vector<4x16xf32>,
    %c0_i32_7 = arith.constant 0 : i32
    %16 = arith.cmpi eq, %arg1, %c0_i32_7 : i32
    %17 = arith.extui %16 : i1 to i32
    %c0_i32_8 = arith.constant 0 : i32
    %18 = arith.cmpi ne, %17, %c0_i32_8 : i32
    scf.if %18 {
      %c0_9 = arith.constant 0 : index
      %c0_10 = arith.constant 0 : index
      %19 = vector.load %arg5[%c0_9, %c0_10] : memref<4x16xf32, #tpu.memory_space<vmem>>, vector<4x16xf32>
      %cst_11 = arith.constant 5.000000e-01 : f32
      %20 = vector.broadcast %cst_11 : f32 to vector<4x16xf32>
      %21 = arith.mulf %20, %19 : vector<4x16xf32>
      %cst_12 = arith.constant 8.500000e+00 : f32
      %22 = vector.broadcast %cst_12 : f32 to vector<4x16xf32>
      %23 = arith.addf %21, %22 : vector<4x16xf32>
      %c0_13 = arith.constant 0 : index
      %c0_14 = arith.constant 0 : index
      %24 = vector.load %arg3[%c0_13, %c0_14] : memref<4x16xf32, #tpu.memory_space<vmem>>, vector<4x16xf32>
      %25 = math.exp2 %24 : vector<4x16xf32>
      %cst_15 = arith.constant 1.000000e+00 : f32
      %26 = vector.broadcast %cst_15 : f32 to vector<4x16xf32>
      %27 = arith.subf %25, %26 : vector<4x16xf32>
      %cst_16 = arith.constant 1.000000e+00 : f32
      %28 = vector.broadcast %cst_16 : f32 to vector<4x16xf32>
      %29 = arith.addf %23, %28 : vector<4x16xf32>
      %30 = math.log %29 : vector<4x16xf32>
      %cst_17 = arith.constant 2.000000e+00 : f32
      %31 = math.log %cst_17 : f32
      %32 = vector.broadcast %31 : f32 to vector<4x16xf32>
      %33 = arith.divf %30, %32 : vector<4x16xf32>
      %34 = tpu.reciprocal %33 : vector<4x16xf32> -> vector<4x16xf32>
      %35 = arith.mulf %27, %34 : vector<4x16xf32>
      %cst_18 = arith.constant dense<0.000000e+00> : vector<4xf32>
      %36 = vector.multi_reduction <add>, %35, %cst_18 [1] : vector<4x16xf32> to vector<4xf32>
      %37 = vector.shape_cast %36 : vector<4xf32> to vector<4x1xf32>
      %c0_19 = arith.constant 0 : index
      %c0_20 = arith.constant 0 : index
      %38 = vector.load %arg4[%c0_19, %c0_20] : memref<4x1xf32, #tpu.memory_space<vmem>>, vector<4x1xf32>
      tpu.vector_store %arg4[%c0_19, %c0_20], %37 {strides = array<i32>} : memref<4x1xf32, #tpu.memory_space<vmem>>, vector<4x1xf32>,
    } else {
    }
    return
  }
  func.func @transform_0(%arg0: i32, %arg1: i32) -> (i32, i32) {
    %c0_i32 = arith.constant 0 : i32
    %c0_i32_0 = arith.constant 0 : i32
    return %arg0, %c0_i32 : i32, i32
  }
  func.func @transform_1(%arg0: i32, %arg1: i32) -> (i32, i32) {
    %c0_i32 = arith.constant 0 : i32
    %c0_i32_0 = arith.constant 0 : i32
    return %arg0, %c0_i32 : i32, i32
  }
  func.func @transform_2(%arg0: i32, %arg1: i32) -> (i32, i32) {
    %c0_i32 = arith.constant 0 : i32
    %c0_i32_0 = arith.constant 0 : i32
    return %arg0, %c0_i32 : i32, i32
  }
}

</mosaic_0001>

<bundles_post_ra>
// kernel: tpu_custom_call.1
= control target key start
LH: loop header
LB: loop body
LE: loop exit
PB: predicated region body
PF: predicated region fallthrough
CT: control target
= control target key end

     0   :  { %7 = vsyncpa [#allocation4], 0  ;;  %s380_s0 = inlined_call_operand.hbm [shape: f32[4,16], index: 0, kind: input, shape index: {}]   ;;  %s381_s1 = inlined_call_operand.hbm [shape: f32[4,16], index: 1, kind: input, shape index: {}]   ;;  %s382_s2 = inlined_call_operand.vmem [shape: f32[4,1], index: 2, kind: output, shape index: {}]  }
   0x1   :  { %8 = vsyncpa [#allocation6], 0  ;;  %s330_s9 = smov [#allocation3]   ;;  %s331_s11 = smov [#allocation5]  }
   0x2   :  { %s15_s10 = sshll.u32 %s330_s9, 4  ;;  %s25_s12 = sshll.u32 %s331_s11, 4  ;;  %s16_s10 = int_to_ptr.vmem [resolvable:$true] %s15_s10  ;;  %s26_s12 = int_to_ptr.vmem [resolvable:$true] %s25_s12 }
   0x3   :  { %s294_s13 = scalar_lea.vmem %s16_s10, 64  ;;  %p299_p1 = scmp.lt.s32.totalorder %s16_s10, %s16_s10 }
   0x4   :  { %p295_p0 = scmp.ne.s32.totalorder %s16_s10, %s294_s13  ;;  %p300_p2 = scmp.lt.s32.totalorder %s294_s13, %s294_s13 }
   0x6   :  { %p301_p3 = por %p300_p2, %p299_p1 }
   0x8   :  { %p302_p4 = pnand %p301_p3, %p295_p0 }
   0xa   :  { %305 = shalt.err (!%p302_p4)
}
   0xb   :  { %18 = dma.hbm_to_vmem [thread:$0]  %s380_s0, 64, %s16_s10, [#allocation4]  }
   0xc   :  { %s314_s16 = scalar_lea.vmem %s26_s12, 64  ;;  %p319_p6 = scmp.lt.s32.totalorder %s26_s12, %s26_s12 }
   0xd   :  { %p315_p5 = scmp.ne.s32.totalorder %s26_s12, %s314_s16  ;;  %p320_p7 = scmp.lt.s32.totalorder %s314_s16, %s314_s16 }
   0xf   :  { %p321_p8 = por %p320_p7, %p319_p6 }
  0x11   :  { %p322_p9 = pnand %p321_p8, %p315_p5 }
  0x13   :  { %325 = shalt.err (!%p322_p9)
}
  0x14   :  { %28 = dma.hbm_to_vmem [thread:$0]  %s381_s1, 64, %s26_s12, [#allocation6]  }
  0x15   :  { %326 = dma.done.wait [#allocation4], 64  }
  0x16   :  { %327 = vsyncadd [#allocation4], 4294967232 }
  0x17   :  { %328 = dma.done.wait [#allocation6], 64  }
  0x18   :  { %329 = vsyncadd [#allocation6], 4294967232  ;;  %v43_v0 = vlaneseq  ;;  %v332_v1 = vmov 1966171168   ;;  %v41_v7 = vld [vmem:[#allocation3] sm:$0xf] }
  0x19   :  { %v89_v2 = vunpack.c.l.s4 %v332_v1  ;;  %v42_v9 = vmul.f32 0.5, %v41_v7  ;;  %vm149_vm0 = vcmask 130048   ;;  %vm39_vm1 = vcmask 125952  }
  0x1a   :  { %v356_v3 = vshrl.u32 %v43_v0, 7  ;;  %v333_v58 = vmov 0.0   ;;  %v183_v60 = vand.u32 127, %v43_v0  ;;  %vm193_vm2 = vcmask 130112  }
  0x1b   :  { %v90_v4 = vunpack.c.0.s8 %v89_v2  ;;  %40 = vst.msk [vmem:[#allocation2] sm:$0xf] %vm39_vm1, %v333_v58  ;;  %vm222_vm3 = vcmask 1041409   ;;  %vm224_vm4 = vcmask 1042434   ;;  %vm226_vm5 = vcmask 1043459  }
  0x1c   :  { %v45_v5 = vsub.s32 0, %v356_v3  ;;  %v56_v6 = vsub.s32 1, %v356_v3  ;;  %v67_v13 = vsub.s32 2, %v356_v3  ;;  %v78_v20 = vsub.s32 3, %v356_v3 }
  0x1d   :  { %v93_v8 = vsub.s32 %v90_v4, %v356_v3  ;;  %v188_v62 = vadd.s32 4294967288, %v183_v60  ;;  %vm251_vm6 = vcmask 3072  }
  0x1e   :  { %v46_v10 = vrot.slane %v42_v9, %v45_v5  ;;  %v57_v11 = vrot.slane %v42_v9, %v56_v6  ;;  %v68_v19 = vrot.slane %v42_v9, %v67_v13  ;;  %v79_v25 = vrot.slane %v42_v9, %v78_v20 }
  0x1f   :  { %v94_v12 = vrot.slane %v42_v9, %v93_v8  ;;  %v191_v2 = vsub.s32 %v188_v62, %v356_v3 }
  0x20   :  { %48 = vbcast.lane.b32.xlu0 %v46_v10, 256  ;;  %59 = vbcast.lane.b32.xlu1 %v57_v11, 256 }
  0x21   :  { %v102_v14 = vrot.slane %v94_v12, %v93_v8  ;;  %v95_v15 = vcombine.high %v94_v12, %v94_v12 }
  0x23   :  { %v115_v16 = vrot.slane %v102_v14, %v45_v5  ;;  %v109_v17 = vrot.slane %v95_v15, %v93_v8  ;;  %v110_v18 = vcombine.high %v102_v14, %v102_v14 }
  0x24   :  { %52 = vbcast.lane.b32.xlu0 %v46_v10, 264  ;;  %63 = vbcast.lane.b32.xlu1 %v57_v11, 264 }
  0x25   :  { %v119_v21 = vrot.slane %v109_v17, %v45_v5  ;;  %v123_v22 = vrot.slane %v110_v18, %v45_v5  ;;  %v111_v23 = vcombine.high %v109_v17, %v109_v17 }
  0x27   :  { %v127_v24 = vrot.slane %v111_v23, %v45_v5  ;;  %v186_v5 = vsub.s32 %v183_v60, %v356_v3  ;;  %v148_v3 = vld [vmem:[#allocation2] sm:$0xf] }
  0x28   :  { %74 = vbcast.lane.b32.xlu1 %v68_v19, 264  ;;  %70 = vbcast.lane.b32.xlu0 %v68_v19, 256 }
  0x2c   :  { %85 = vbcast.lane.b32.xlu1 %v79_v25, 264  ;;  %81 = vbcast.lane.b32.xlu0 %v79_v25, 256 }
  0x92   :  { %v49_v26 = vpop.permute.xlu0 %48  ;;  %v60_v27 = vpop.permute.xlu1 %59 }
  0x93   :  { %v132_v28 = vsub.f32 %v49_v26, %v115_v16  ;;  %v134_v29 = vsub.f32 %v60_v27, %v119_v21 }
  0x95   :  { %264 = verf.f32 %v132_v28  ;;  %v238_v28 = vld [vmem:[#allocation5] sm:$0xf] }
  0x96   :  { %266 = verf.f32 %v134_v29  ;;  %v53_v30 = vpop.permute.xlu0 %52  ;;  %v64_v31 = vpop.permute.xlu1 %63 }
  0x97   :  { %v133_v32 = vsub.f32 %v53_v30, %v115_v16  ;;  %v135_v33 = vsub.f32 %v64_v31, %v119_v21 }
  0x99   :  { %268 = verf.f32 %v133_v32 }
  0x9a   :  { %270 = verf.f32 %v135_v33  ;;  %v75_v34 = vpop.permute.xlu1 %74  ;;  %v71_v35 = vpop.permute.xlu0 %70 }
  0x9b   :  { %v137_v36 = vsub.f32 %v75_v34, %v123_v22  ;;  %v136_v37 = vsub.f32 %v71_v35, %v123_v22 }
  0x9d   :  { %272 = verf.f32 %v137_v36 }
  0x9e   :  { %274 = verf.f32 %v136_v37  ;;  %v86_v38 = vpop.permute.xlu1 %85  ;;  %v82_v39 = vpop.permute.xlu0 %81 }
  0x9f   :  { %v139_v40 = vsub.f32 %v86_v38, %v127_v24  ;;  %v138_v41 = vsub.f32 %v82_v39, %v127_v24 }
  0xa1   :  { %276 = verf.f32 %v139_v40 }
  0xa2   :  { %v265_v42 = vpop.eup %264  ;;  %278 = verf.f32 %v138_v41 }
  0xa3   :  { %v267_v43 = vpop.eup %266  ;;  %v150_v44 = vsel %vm149_vm0, %v265_v42, 0.0 }
  0xa4   :  { %151 = vadd.xlane.f32.xlu0 %v150_v44  ;;  %v156_v45 = vsel %vm149_vm0, %v267_v43, 0.0 }
  0xa6   :  { %v269_v46 = vpop.eup %268 }
  0xa7   :  { %v271_v47 = vpop.eup %270  ;;  %v153_v48 = vsel %vm149_vm0, %v269_v46, 0.0 }
  0xa8   :  { %157 = vadd.xlane.f32.xlu0 %v156_v45  ;;  %154 = vadd.xlane.f32.xlu1 %v153_v48  ;;  %v159_v49 = vsel %vm149_vm0, %v271_v47, 0.0 }
  0xaa   :  { %v273_v50 = vpop.eup %272 }
  0xab   :  { %v275_v51 = vpop.eup %274  ;;  %v165_v53 = vsel %vm149_vm0, %v273_v50, 0.0 }
  0xac   :  { %160 = vadd.xlane.f32.xlu0 %v159_v49  ;;  %v162_v52 = vsel %vm149_vm0, %v275_v51, 0.0 }
  0xad   :  { %163 = vadd.xlane.f32.xlu1 %v162_v52 }
  0xae   :  { %v277_v54 = vpop.eup %276 }
  0xaf   :  { %v279_v55 = vpop.eup %278  ;;  %v171_v57 = vsel %vm149_vm0, %v277_v54, 0.0 }
  0xb0   :  { %166 = vadd.xlane.f32.xlu0 %v165_v53  ;;  %v168_v56 = vsel %vm149_vm0, %v279_v55, 0.0 }
  0xb1   :  { %169 = vadd.xlane.f32.xlu1 %v168_v56 }
  0xb4   :  { %172 = vadd.xlane.f32.xlu0 %v171_v57 }
 0x12d   :  { %v152_v59 = vpop.xlane.xlu0 %151 }
 0x12e   :  { %v187_v13 = vrot.slane %v152_v59, %v186_v5 }
 0x131   :  { %v158_v61 = vpop.xlane.xlu0 %157  ;;  %v155_v63 = vpop.xlane.xlu1 %154 }
 0x132   :  { %v192_v9 = vrot.slane %v155_v63, %v191_v2  ;;  %v198_v10 = vrot.slane %v158_v61, %v186_v5 }
 0x134   :  { %v194_v17 = vsel %vm193_vm2, %v192_v9, %v187_v13 }
 0x135   :  { %v161_v1 = vpop.xlane.xlu0 %160 }
 0x136   :  { %v164_v4 = vpop.xlane.xlu1 %163  ;;  %v202_v6 = vrot.slane %v161_v1, %v191_v2 }
 0x137   :  { %v207_v7 = vrot.slane %v164_v4, %v186_v5 }
 0x138   :  { %v203_v0 = vsel %vm193_vm2, %v202_v6, %v198_v10 }
 0x139   :  { %v167_v8 = vpop.xlane.xlu0 %166  ;;  %v223_v19 = vsel %vm222_vm3, %v203_v0, %v194_v17 }
 0x13a   :  { %v211_v11 = vrot.slane %v167_v8, %v191_v2  ;;  %v170_v12 = vpop.xlane.xlu1 %169 }
 0x13b   :  { %v216_v14 = vrot.slane %v170_v12, %v186_v5 }
 0x13c   :  { %v212_v15 = vsel %vm193_vm2, %v211_v11, %v207_v7 }
 0x13d   :  { %v173_v16 = vpop.xlane.xlu0 %172  ;;  %v225_v20 = vsel %vm224_vm4, %v212_v15, %v223_v19 }
 0x13e   :  { %v220_v18 = vrot.slane %v173_v16, %v191_v2 }
 0x140   :  { %v221_v21 = vsel %vm193_vm2, %v220_v18, %v216_v14 }
 0x141   :  { %v227_v22 = vsel %vm226_vm5, %v221_v21, %v225_v20 }
 0x142   :  { %v229_v23 = vadd.f32 %v227_v22, %v148_v3 }
 0x144   :  { %231 = vst.msk [vmem:[#allocation2] sm:$0xf] %vm39_vm1, %v229_v23 }
 0x14b   :  { %v235_v24 = vld [vmem:[#allocation2] sm:$0xf] }
 0x14c   :  { %v236_v25 = vmul.f32 0.5, %v235_v24 }
 0x14e   :  { %v237_v26 = vadd.f32 8.5, %v236_v25 }
 0x150   :  { %v241_v27 = vadd.f32 1.0, %v237_v26 }
 0x152   :  { %280 = vlog2.f32 %v241_v27 }
 0x153   :  { %282 = vpow2.f32 %v238_v28 }
 0x15f   :  { %v281_v29 = vpop.eup %280 }
 0x160   :  { %v243_v30 = vmul.f32 0.6931472, %v281_v29  ;;  %v283_v32 = vpop.eup %282 }
 0x161   :  { %v259_v33 = vadd.f32 -1.0, %v283_v32 }
 0x162   :  { %v245_v31 = vmul.f32 1.442695, %v243_v30 }
 0x164   :  { %284 = vrcp.f32 %v245_v31 }
 0x171   :  { %v285_v34 = vpop.eup %284 }
 0x172   :  { %v247_v35 = vmul.f32 %v285_v34, %v259_v33 }
 0x174   :  { %v248_v36 = vsel %vm39_vm1, %v247_v35, 0.0 }
 0x175   :  { %249 = vadd.xlane.f32.xlu1 %v248_v36 }
 0x1fe   :  { %v250_v37 = vpop.xlane.xlu1 %249 }
 0x1ff   :  { %252 = vst.msk [vmem:[%s382_s2] sm:$0xf] %vm251_vm6, %v250_v37 }
 0x200   :  { %257 = vsyncpa [#allocation4], 1 }
 0x201   :  { %258 = vsyncpa [#allocation6], 1 }

</bundles_post_ra>
